<compile_context>
chip_gen: v7x
topology: tpu7x:2x2x1
jax: 0.10.0
libtpu: 0.0.40
codegen_flags: <defaults>
</compile_context>

<pallas_src>
import functools

import jax
import jax.numpy as jnp
from jax.experimental import pallas as pl
from jax.experimental.pallas import tpu as pltpu

BN_EPS = 1e-5


def _round_up(n, m):
    return ((n + m - 1) // m) * m


def _vmem_budget_bytes():
    """~3/4 of physical VMEM (96 MiB on v5e/v6e, 48 MiB on v7x); conservative fallback."""
    try:
        cap = int(pltpu.get_tpu_info().vmem_capacity_bytes)
    except Exception:
        cap = 64 * 1024 * 1024
    return (cap // 4) * 3


def _netwrapper_kernel(
    x_ref,        # (B_pad, tk)              f32 input K-tile
    w1_ref,       # (tk, D_feat_pad)         bf16 backbone Linear weight K-tile
    wp1_ref,      # (D_feat_pad, H_pad)      bf16 projector Linear1 weight (resident)
    wp2_ref,      # (H_pad, P_pad)           bf16 projector Linear2 weight (resident)
    vec_ref,      # (8, Wmax)                f32 packed [b1, bp1, gamma, beta, bp2, 0, 0, 0]
    proj_ref,     # out: (B_pad, P_pad)      f32
    rep_ref,      # out: (B_pad, D_feat_pad) f32 — doubles as the K-reduction accumulator
    *,
    b_real,       # static: true batch size (BN stats over these rows only)
    d_feat_pad,
    h_pad,
    p_pad,
):
    k = pl.program_id(0)
    nk = pl.num_programs(0)

    # ---- K-tiled backbone GEMM: accumulate directly into the resident rep block ----
    @pl.when(k == 0)
    def _():
        rep_ref[...] = jnp.zeros_like(rep_ref)

    # bf16 x bf16 operands, f32 MXU accumulation (single-pass MXU on v5e/v6e/v7x).
    rep_ref[...] += jnp.dot(
        x_ref[...].astype(jnp.bfloat16),
        w1_ref[...],
        preferred_element_type=jnp.float32,
    )

    # ---- finalize: backbone bias+ReLU (hooked hidden), projector MLP, outputs ----
    @pl.when(k == nk - 1)
    def _():
        vec = vec_ref[...]
        b1 = vec[0:1, :d_feat_pad]
        bp1 = vec[1:2, :h_pad]
        gamma = vec[2:3, :h_pad]
        beta = vec[3:4, :h_pad]
        bp2 = vec[4:5, :p_pad]

        rep = jnp.maximum(rep_ref[...] + b1, 0.0)      # hooked hidden (already flat)
        rep_ref[...] = rep

        h = jnp.dot(
            rep.astype(jnp.bfloat16), wp1_ref[...],
            preferred_element_type=jnp.float32,
        ) + bp1

        # BatchNorm1d training-mode batch stats over the REAL rows only
        # (padded batch rows are masked out of the statistics).
        row = jax.lax.broadcasted_iota(jnp.int32, h.shape, 0)
        valid = (row < b_real).astype(jnp.float32)
        inv_b = 1.0 / float(b_real)
        mean = jnp.sum(h * valid, axis=0, keepdims=True) * inv_b
        cent = (h - mean) * valid
        var = jnp.sum(cent * cent, axis=0, keepdims=True) * inv_b   # biased var

        # folded affine: single FMA per element
        s = gamma * jax.lax.rsqrt(var + BN_EPS)
        t = beta - mean * s
        h_relu = jnp.maximum(h * s + t, 0.0)

        proj = jnp.dot(
            h_relu.astype(jnp.bfloat16), wp2_ref[...],
            preferred_element_type=jnp.float32,
        ) + bp2
        proj_ref[...] = proj.astype(proj_ref.dtype)


def prepare_params(params, *, batch_hint=8):
    """One-time preparation: pad + bf16-cast weights, pack the bias/BN vector slab,
    and derive the K-tile / VMEM budget for the current TPU generation."""
    (w1, b1, wp1, bp1, gamma, beta, wp2, bp2) = params
    d_in, d_feat = w1.shape
    h = wp1.shape[1]
    p = wp2.shape[1]

    b_pad_hint = _round_up(max(batch_hint, 1), 8)
    d_feat_pad = _round_up(d_feat, 128)       # lane-dense rep output
    h_pad = _round_up(h, 128)
    p_pad = _round_up(p, 128)                 # lane-dense proj output
    wmax = max(d_feat_pad, h_pad, p_pad)

    # --- VMEM-budgeted K tile: resident blocks + double-buffered streams must fit ---
    budget = _vmem_budget_bytes()
    fixed = (d_feat_pad * h_pad * 2 + h_pad * p_pad * 2        # wp1, wp2 (bf16, single-buffered)
             + 8 * wmax * 4                                    # packed vector slab
             + 2 * b_pad_hint * (p_pad + d_feat_pad) * 4)      # outputs (f32, double-buffered)
    per_k = 2 * (b_pad_hint * 4 + d_feat_pad * 2)              # x (f32) + w1 (bf16) per K element, double-buffered
    avail = max(budget - fixed, per_k * 128)
    tk = max((avail // per_k) // 128, 1) * 128
    tk = min(tk, _round_up(d_in, 128))        # single grid step when the whole w1 fits
    d_in_pad = _round_up(d_in, tk)
    k_tiles = d_in_pad // tk

    # --- pad weights once; store bf16 (halves HBM weight traffic, native MXU operand) ---
    w1_p = (jnp.zeros((d_in_pad, d_feat_pad), jnp.float32)
            .at[:d_in, :d_feat].set(w1).astype(jnp.bfloat16))
    wp1_p = (jnp.zeros((d_feat_pad, h_pad), jnp.float32)
             .at[:d_feat, :h].set(wp1).astype(jnp.bfloat16))
    wp2_p = (jnp.zeros((h_pad, p_pad), jnp.float32)
             .at[:h, :p].set(wp2).astype(jnp.bfloat16))

    # --- coalesce the five tiny (1, D) vectors into a single (8, Wmax) slab ---
    vecs = jnp.zeros((8, wmax), jnp.float32)
    vecs = vecs.at[0, :d_feat].set(b1.reshape(-1))
    vecs = vecs.at[1, :h].set(bp1.reshape(-1))
    vecs = vecs.at[2, :h].set(gamma.reshape(-1))
    vecs = vecs.at[3, :h].set(beta.reshape(-1))
    vecs = vecs.at[4, :p].set(bp2.reshape(-1))

    geom = dict(
        d_in=d_in, d_feat=d_feat, h=h, p=p,
        d_in_pad=d_in_pad, d_feat_pad=d_feat_pad, h_pad=h_pad, p_pad=p_pad,
        wmax=wmax, tk=tk, k_tiles=k_tiles,
        vmem_limit=int(min(budget, 128 * 1024 * 1024)),
    )
    return dict(w1=w1_p, wp1=wp1_p, wp2=wp2_p, vecs=vecs, geom=geom)


def netwrapper_forward(x_nchw, prep):
    """Runs the NetWrapper forward with prepared params. Returns (projection, representation)."""
    g = prep["geom"]
    B = x_nchw.shape[0]
    assert B >= 1
    x_flat = x_nchw.reshape(B, -1).astype(jnp.float32)   # flatten(...) semantics
    assert x_flat.shape[1] == g["d_in"]

    b_pad = _round_up(B, 8)                              # f32 sublane multiple
    x_p = jnp.zeros((b_pad, g["d_in_pad"]), jnp.float32).at[:B, :g["d_in"]].set(x_flat)

    tk = g["tk"]
    d_feat_pad, h_pad, p_pad, wmax = g["d_feat_pad"], g["h_pad"], g["p_pad"], g["wmax"]

    kernel = functools.partial(
        _netwrapper_kernel,
        b_real=B, d_feat_pad=d_feat_pad, h_pad=h_pad, p_pad=p_pad,
    )

    proj_p, rep_p = pl.pallas_call(
        kernel,
        out_shape=[
            jax.ShapeDtypeStruct((b_pad, p_pad), jnp.float32),
            jax.ShapeDtypeStruct((b_pad, d_feat_pad), jnp.float32),
        ],
        grid_spec=pltpu.PrefetchScalarGridSpec(
            num_scalar_prefetch=0,
            grid=(g["k_tiles"],),
            in_specs=[
                pl.BlockSpec((b_pad, tk), lambda k: (0, k)),              # x K-tile
                pl.BlockSpec((tk, d_feat_pad), lambda k: (k, 0)),         # w1 K-tile
                pl.BlockSpec((d_feat_pad, h_pad), lambda k: (0, 0),
                             pipeline_mode=pl.Buffered(1)),               # wp1 (fetched once)
                pl.BlockSpec((h_pad, p_pad), lambda k: (0, 0),
                             pipeline_mode=pl.Buffered(1)),               # wp2 (fetched once)
                pl.BlockSpec((8, wmax), lambda k: (0, 0),
                             pipeline_mode=pl.Buffered(1)),               # packed vectors
            ],
            out_specs=[
                pl.BlockSpec((b_pad, p_pad), lambda k: (0, 0)),           # proj (resident)
                pl.BlockSpec((b_pad, d_feat_pad), lambda k: (0, 0)),      # rep (resident, accumulator)
            ],
        ),
        compiler_params=pltpu.CompilerParams(
            dimension_semantics=("arbitrary",),      # K is a reduction axis
            vmem_limit_bytes=g["vmem_limit"],
        ),
    )(x_p, prep["w1"], prep["wp1"], prep["wp2"], prep["vecs"])

    # slice the padding back off
    return proj_p[:B, :g["p"]], rep_p[:B, :g["d_feat"]]


def init_params(key, d_in, d_feat, proj_hidden, proj_size):
    """Deterministic synthetic init (synthetic backbone, not a checkpoint load)."""
    ks = jax.random.split(key, 6)
    # weights stored (in_features, out_features) so the kernel does x @ W directly
    w1 = jax.random.normal(ks[0], (d_in, d_feat), jnp.float32) * (1.0 / jnp.sqrt(d_in))
    b1 = jax.random.normal(ks[1], (1, d_feat), jnp.float32) * 0.01
    wp1 = jax.random.normal(ks[2], (d_feat, proj_hidden), jnp.float32) * (1.0 / jnp.sqrt(d_feat))
    bp1 = jax.random.normal(ks[3], (1, proj_hidden), jnp.float32) * 0.01
    gamma = jnp.ones((1, proj_hidden), jnp.float32)       # BatchNorm1d default weight
    beta = jnp.zeros((1, proj_hidden), jnp.float32)       # BatchNorm1d default bias
    wp2 = jax.random.normal(ks[4], (proj_hidden, proj_size), jnp.float32) * (1.0 / jnp.sqrt(proj_hidden))
    bp2 = jax.random.normal(ks[5], (1, proj_size), jnp.float32) * 0.01
    return (w1, b1, wp1, bp1, gamma, beta, wp2, bp2)


def reference_forward(x_nchw, params):
    """Pure-JAX reference mirroring the kernel's declared math: bf16 weight storage,
    bf16 matmul operands, f32 accumulation, f32 elementwise / BN math."""
    (w1, b1, wp1, bp1, gamma, beta, wp2, bp2) = params
    qb = lambda a: a.astype(jnp.bfloat16)
    B = x_nchw.shape[0]
    x = x_nchw.reshape(B, -1).astype(jnp.float32)
    rep = jnp.maximum(
        jnp.dot(qb(x), qb(w1), preferred_element_type=jnp.float32) + b1, 0.0)
    h = jnp.dot(qb(rep), qb(wp1), preferred_element_type=jnp.float32) + bp1
    mean = jnp.mean(h, axis=0, keepdims=True)
    var = jnp.mean((h - mean) ** 2, axis=0, keepdims=True)
    h_bn = (h - mean) * jax.lax.rsqrt(var + BN_EPS) * gamma + beta
    h_relu = jnp.maximum(h_bn, 0.0)
    proj = jnp.dot(qb(h_relu), qb(wp2), preferred_element_type=jnp.float32) + bp2
    return proj, rep


if __name__ == "__main__":
    # small shapes consistent with the module's forward
    B, C, Hs, Ws = 2, 4, 16, 16          # input image, NCHW
    D_in = C * Hs * Ws                   # 1024 after flatten
    D_feat = 64                          # hooked hidden (representation) dim
    PROJ_HIDDEN = 128                    # projection_hidden_size
    PROJ_SIZE = 32                       # projection_size

    key = jax.random.PRNGKey(0)
    kx, kp = jax.random.split(key)
    x = jax.random.normal(kx, (B, C, Hs, Ws), jnp.float32)
    params = init_params(kp, D_in, D_feat, PROJ_HIDDEN, PROJ_SIZE)

    prep = prepare_params(params, batch_hint=B)          # one-time pad/cast/pack
    proj, rep = netwrapper_forward(x, prep)
    proj = jax.block_until_ready(proj)
    rep = jax.block_until_ready(rep)

    proj_ref, rep_ref = reference_forward(x, params)
    assert proj.shape == (B, PROJ_SIZE) and rep.shape == (B, D_feat)
    assert jnp.allclose(rep, rep_ref, atol=2e-2, rtol=2e-2)
    assert jnp.allclose(proj, proj_ref, atol=2e-2, rtol=2e-2)

    print("KERNEL_OK")
</pallas_src>

<mosaic_0001>
module attributes {stable_mosaic.version = 11 : i64} {
  func.func @_netwrapper_kernel(%arg0: i32, %arg1: memref<8x1024xf32, #tpu.memory_space<vmem>>, %arg2: memref<1024x128xbf16, #tpu.memory_space<vmem>>, %arg3: memref<128x128xbf16, #tpu.memory_space<vmem>>, %arg4: memref<128x128xbf16, #tpu.memory_space<vmem>>, %arg5: memref<8x128xf32, #tpu.memory_space<vmem>>, %arg6: memref<8x128xf32, #tpu.memory_space<vmem>>, %arg7: memref<8x128xf32, #tpu.memory_space<vmem>>) attributes {dimension_semantics = [#tpu.dimension_semantics<arbitrary>], iteration_bounds = array<i64: 1>, scalar_prefetch = 0 : i64, scratch_operands = 0 : i64, tpu.core_type = #tpu.core_type<tc>, window_params = [{transform_indices = @transform_0, window_bounds = array<i64: 8, 1024>}, {transform_indices = @transform_1, window_bounds = array<i64: 1024, 128>}, {pipeline_mode = #tpu.pipeline_mode<synchronous>, transform_indices = @transform_2, window_bounds = array<i64: 128, 128>}, {pipeline_mode = #tpu.pipeline_mode<synchronous>, transform_indices = @transform_3, window_bounds = array<i64: 128, 128>}, {pipeline_mode = #tpu.pipeline_mode<synchronous>, transform_indices = @transform_4, window_bounds = array<i64: 8, 128>}, {pipeline_mode = #tpu.pipeline_mode<synchronous>, transform_indices = @transform_5, window_bounds = array<i64: 8, 128>}, {pipeline_mode = #tpu.pipeline_mode<synchronous>, transform_indices = @transform_6, window_bounds = array<i64: 8, 128>}]} {
    %c0_i32 = arith.constant 0 : i32
    %0 = arith.cmpi eq, %arg0, %c0_i32 : i32
    %1 = arith.extui %0 : i1 to i32
    %c0_i32_0 = arith.constant 0 : i32
    %2 = arith.cmpi ne, %1, %c0_i32_0 : i32
    scf.if %2 {
      %cst_10 = arith.constant 0.000000e+00 : f32
      %13 = vector.broadcast %cst_10 : f32 to vector<8x128xf32>
      %c0_11 = arith.constant 0 : index
      %c0_12 = arith.constant 0 : index
      %14 = vector.load %arg7[%c0_11, %c0_12] : memref<8x128xf32, #tpu.memory_space<vmem>>, vector<8x128xf32>
      tpu.vector_store %arg7[%c0_11, %c0_12], %13 {strides = array<i32>} : memref<8x128xf32, #tpu.memory_space<vmem>>, vector<8x128xf32>,
    } else {
    }
    %c0 = arith.constant 0 : index
    %c0_1 = arith.constant 0 : index
    %3 = vector.load %arg7[%c0, %c0_1] : memref<8x128xf32, #tpu.memory_space<vmem>>, vector<8x128xf32>
    %c0_2 = arith.constant 0 : index
    %c0_3 = arith.constant 0 : index
    %4 = vector.load %arg1[%c0_2, %c0_3] : memref<8x1024xf32, #tpu.memory_space<vmem>>, vector<8x1024xf32>
    %5 = arith.truncf %4 : vector<8x1024xf32> to vector<8x1024xbf16>
    %c0_4 = arith.constant 0 : index
    %c0_5 = arith.constant 0 : index
    %6 = vector.load %arg2[%c0_4, %c0_5] : memref<1024x128xbf16, #tpu.memory_space<vmem>>, vector<1024x128xbf16>
    %cst = arith.constant dense<0.000000e+00> : vector<8x128xf32>
    %7 = tpu.matmul %5, %6, %cst {dimension_numbers = #tpu.dot_dimension_numbers<[1], [0], [0], [1], [0, 0, 1, 1], [], []>} : vector<8x1024xbf16>, vector<1024x128xbf16>, vector<8x128xf32> -> vector<8x128xf32>
    %8 = arith.addf %3, %7 : vector<8x128xf32>
    %c0_6 = arith.constant 0 : index
    %c0_7 = arith.constant 0 : index
    %9 = vector.load %arg7[%c0_6, %c0_7] : memref<8x128xf32, #tpu.memory_space<vmem>>, vector<8x128xf32>
    tpu.vector_store %arg7[%c0_6, %c0_7], %8 {strides = array<i32>} : memref<8x128xf32, #tpu.memory_space<vmem>>, vector<8x128xf32>,
    %c0_i32_8 = arith.constant 0 : i32
    %10 = arith.cmpi eq, %arg0, %c0_i32_8 : i32
    %11 = arith.extui %10 : i1 to i32
    %c0_i32_9 = arith.constant 0 : i32
    %12 = arith.cmpi ne, %11, %c0_i32_9 : i32
    scf.if %12 {
      %c0_10 = arith.constant 0 : index
      %c0_11 = arith.constant 0 : index
      %13 = vector.load %arg5[%c0_10, %c0_11] : memref<8x128xf32, #tpu.memory_space<vmem>>, vector<8x128xf32>
      %14 = vector.extract_strided_slice %13 {offsets = [0, 0], sizes = [1, 128], strides = [1, 1]} : vector<8x128xf32> to vector<1x128xf32>
      %15 = vector.extract_strided_slice %13 {offsets = [1, 0], sizes = [1, 128], strides = [1, 1]} : vector<8x128xf32> to vector<1x128xf32>
      %16 = vector.extract_strided_slice %13 {offsets = [2, 0], sizes = [1, 128], strides = [1, 1]} : vector<8x128xf32> to vector<1x128xf32>
      %17 = vector.extract_strided_slice %13 {offsets = [3, 0], sizes = [1, 128], strides = [1, 1]} : vector<8x128xf32> to vector<1x128xf32>
      %18 = vector.extract_strided_slice %13 {offsets = [4, 0], sizes = [1, 128], strides = [1, 1]} : vector<8x128xf32> to vector<1x128xf32>
      %c0_12 = arith.constant 0 : index
      %c0_13 = arith.constant 0 : index
      %19 = vector.load %arg7[%c0_12, %c0_13] : memref<8x128xf32, #tpu.memory_space<vmem>>, vector<8x128xf32>
      %20 = vector.broadcast %14 : vector<1x128xf32> to vector<8x128xf32>
      %21 = arith.addf %19, %20 : vector<8x128xf32>
      %cst_14 = arith.constant 0.000000e+00 : f32
      %22 = vector.broadcast %cst_14 : f32 to vector<8x128xf32>
      %23 = arith.maximumf %21, %22 : vector<8x128xf32>
      %c0_15 = arith.constant 0 : index
      %c0_16 = arith.constant 0 : index
      %24 = vector.load %arg7[%c0_15, %c0_16] : memref<8x128xf32, #tpu.memory_space<vmem>>, vector<8x128xf32>
      tpu.vector_store %arg7[%c0_15, %c0_16], %23 {strides = array<i32>} : memref<8x128xf32, #tpu.memory_space<vmem>>, vector<8x128xf32>,
      %25 = arith.truncf %23 : vector<8x128xf32> to vector<8x128xbf16>
      %c0_17 = arith.constant 0 : index
      %c0_18 = arith.constant 0 : index
      %26 = vector.load %arg3[%c0_17, %c0_18] : memref<128x128xbf16, #tpu.memory_space<vmem>>, vector<128x128xbf16>
      %cst_19 = arith.constant dense<0.000000e+00> : vector<8x128xf32>
      %27 = tpu.matmul %25, %26, %cst_19 {dimension_numbers = #tpu.dot_dimension_numbers<[1], [0], [0], [1], [0, 0, 1, 1], [], []>} : vector<8x128xbf16>, vector<128x128xbf16>, vector<8x128xf32> -> vector<8x128xf32>
      %28 = vector.broadcast %15 : vector<1x128xf32> to vector<8x128xf32>
      %29 = arith.addf %27, %28 : vector<8x128xf32>
      %30 = tpu.iota {dimensions = array<i32: 0>} : vector<8x128xi32>
      %c2_i32 = arith.constant 2 : i32
      %31 = vector.broadcast %c2_i32 : i32 to vector<8x128xi32>
      %32 = arith.cmpi slt, %30, %31 : vector<8x128xi32>
      %33 = arith.extui %32 : vector<8x128xi1> to vector<8x128xi32>
      %34 = arith.sitofp %33 : vector<8x128xi32> to vector<8x128xf32>
      %35 = arith.mulf %29, %34 : vector<8x128xf32>
      %cst_20 = arith.constant dense<0.000000e+00> : vector<128xf32>
      %36 = vector.multi_reduction <add>, %35, %cst_20 [0] : vector<8x128xf32> to vector<128xf32>
      %37 = vector.shape_cast %36 : vector<128xf32> to vector<1x128xf32>
      %cst_21 = arith.constant 5.000000e-01 : f32
      %38 = vector.broadcast %cst_21 : f32 to vector<1x128xf32>
      %39 = arith.mulf %37, %38 : vector<1x128xf32>
      %40 = vector.broadcast %39 : vector<1x128xf32> to vector<8x128xf32>
      %41 = arith.subf %29, %40 : vector<8x128xf32>
      %42 = arith.mulf %41, %34 : vector<8x128xf32>
      %43 = arith.mulf %42, %42 : vector<8x128xf32>
      %cst_22 = arith.constant dense<0.000000e+00> : vector<128xf32>
      %44 = vector.multi_reduction <add>, %43, %cst_22 [0] : vector<8x128xf32> to vector<128xf32>
      %45 = vector.shape_cast %44 : vector<128xf32> to vector<1x128xf32>
      %cst_23 = arith.constant 5.000000e-01 : f32
      %46 = vector.broadcast %cst_23 : f32 to vector<1x128xf32>
      %47 = arith.mulf %45, %46 : vector<1x128xf32>
      %cst_24 = arith.constant 9.99999974E-6 : f32
      %48 = vector.broadcast %cst_24 : f32 to vector<1x128xf32>
      %49 = arith.addf %47, %48 : vector<1x128xf32>
      %50 = math.rsqrt %49 : vector<1x128xf32>
      %51 = arith.mulf %16, %50 : vector<1x128xf32>
      %52 = arith.mulf %39, %51 : vector<1x128xf32>
      %53 = arith.subf %17, %52 : vector<1x128xf32>
      %54 = vector.broadcast %51 : vector<1x128xf32> to vector<8x128xf32>
      %55 = arith.mulf %29, %54 : vector<8x128xf32>
      %56 = vector.broadcast %53 : vector<1x128xf32> to vector<8x128xf32>
      %57 = arith.addf %55, %56 : vector<8x128xf32>
      %cst_25 = arith.constant 0.000000e+00 : f32
      %58 = vector.broadcast %cst_25 : f32 to vector<8x128xf32>
      %59 = arith.maximumf %57, %58 : vector<8x128xf32>
      %60 = arith.truncf %59 : vector<8x128xf32> to vector<8x128xbf16>
      %c0_26 = arith.constant 0 : index
      %c0_27 = arith.constant 0 : index
      %61 = vector.load %arg4[%c0_26, %c0_27] : memref<128x128xbf16, #tpu.memory_space<vmem>>, vector<128x128xbf16>
      %cst_28 = arith.constant dense<0.000000e+00> : vector<8x128xf32>
      %62 = tpu.matmul %60, %61, %cst_28 {dimension_numbers = #tpu.dot_dimension_numbers<[1], [0], [0], [1], [0, 0, 1, 1], [], []>} : vector<8x128xbf16>, vector<128x128xbf16>, vector<8x128xf32> -> vector<8x128xf32>
      %63 = vector.broadcast %18 : vector<1x128xf32> to vector<8x128xf32>
      %64 = arith.addf %62, %63 : vector<8x128xf32>
      %c0_29 = arith.constant 0 : index
      %c0_30 = arith.constant 0 : index
      %65 = vector.load %arg6[%c0_29, %c0_30] : memref<8x128xf32, #tpu.memory_space<vmem>>, vector<8x128xf32>
      tpu.vector_store %arg6[%c0_29, %c0_30], %64 {strides = array<i32>} : memref<8x128xf32, #tpu.memory_space<vmem>>, vector<8x128xf32>,
    } else {
    }
    return
  }
  func.func @transform_0(%arg0: i32) -> (i32, i32) {
    %c0_i32 = arith.constant 0 : i32
    %c0_i32_0 = arith.constant 0 : i32
    return %c0_i32, %arg0 : i32, i32
  }
  func.func @transform_1(%arg0: i32) -> (i32, i32) {
    %c0_i32 = arith.constant 0 : i32
    %c0_i32_0 = arith.constant 0 : i32
    return %arg0, %c0_i32 : i32, i32
  }
  func.func @transform_2(%arg0: i32) -> (i32, i32) {
    %c0_i32 = arith.constant 0 : i32
    %c0_i32_0 = arith.constant 0 : i32
    %c0_i32_1 = arith.constant 0 : i32
    return %c0_i32, %c0_i32_0 : i32, i32
  }
  func.func @transform_3(%arg0: i32) -> (i32, i32) {
    %c0_i32 = arith.constant 0 : i32
    %c0_i32_0 = arith.constant 0 : i32
    %c0_i32_1 = arith.constant 0 : i32
    return %c0_i32, %c0_i32_0 : i32, i32
  }
  func.func @transform_4(%arg0: i32) -> (i32, i32) {
    %c0_i32 = arith.constant 0 : i32
    %c0_i32_0 = arith.constant 0 : i32
    %c0_i32_1 = arith.constant 0 : i32
    return %c0_i32, %c0_i32_0 : i32, i32
  }
  func.func @transform_5(%arg0: i32) -> (i32, i32) {
    %c0_i32 = arith.constant 0 : i32
    %c0_i32_0 = arith.constant 0 : i32
    %c0_i32_1 = arith.constant 0 : i32
    return %c0_i32, %c0_i32_0 : i32, i32
  }
  func.func @transform_6(%arg0: i32) -> (i32, i32) {
    %c0_i32 = arith.constant 0 : i32
    %c0_i32_0 = arith.constant 0 : i32
    %c0_i32_1 = arith.constant 0 : i32
    return %c0_i32, %c0_i32_0 : i32, i32
  }
}

</mosaic_0001>

<bundles_post_ra>
// kernel: tpu_custom_call.1
= control target key start
LH: loop header
LB: loop body
LE: loop exit
PB: predicated region body
PF: predicated region fallthrough
CT: control target
= control target key end

     0   :  { %12 = vsyncpa [#allocation3], 0  ;;  %s1702_s0 = inlined_call_operand.hbm [shape: f32[8,1024], index: 0, kind: input, shape index: {}]   ;;  %s1703_s1 = inlined_call_operand.hbm [shape: bf16[1024,128], index: 1, kind: input, shape index: {}]   ;;  %s1704_s2 = inlined_call_operand.hbm [shape: bf16[128,128], index: 2, kind: input, shape index: {}]   ;;  %s1705_s3 = inlined_call_operand.hbm [shape: bf16[128,128], index: 3, kind: input, shape index: {}]   ;;  %s1706_s4 = inlined_call_operand.vmem [shape: f32[8,128], index: 4, kind: input, shape index: {}]   ;;  %s1707_s5 = inlined_call_operand.hbm [shape: f32[8,128], index: 5, kind: output, shape index: {0}]   ;;  %s1708_s6 = inlined_call_operand.hbm [shape: f32[8,128], index: 6, kind: output, shape index: {1}]  }
   0x1   :  { %13 = vsyncpa [#allocation6], 0 }
   0x2   :  { %14 = vsyncpa [#allocation9], 0 }
   0x3   :  { %15 = vsyncpa [#allocation4], 0 }
   0x4   :  { %16 = vsyncpa [#allocation12], 0  ;;  %s1539_s21 = smov [#allocation5]   ;;  %s1397_s25 = scalar_lea.hbm %s1703_s1, 8192 }
   0x5   :  { %s32_s22 = sshll.u32 %s1539_s21, 4  ;;  %p1398_p0 = scmp.ne.s32.totalorder %s1703_s1, %s1397_s25  ;;  %s33_s22 = int_to_ptr.vmem [resolvable:$true] %s32_s22 }
   0x6   :  { %p1401_p1 = scmp.lt.u32.totalorder %s1397_s25, %s1703_s1 }
   0x8   :  { %p1403_p2 = pnand %p1401_p1, %p1398_p0 }
   0xa   :  { %1406 = shalt.err (!%p1403_p2)
}
   0xb   :  { %s1407_s30 = scalar_lea.vmem %s33_s22, 8192  ;;  %p1412_p4 = scmp.lt.s32.totalorder %s33_s22, %s33_s22 }
   0xc   :  { %p1408_p3 = scmp.ne.s32.totalorder %s33_s22, %s1407_s30  ;;  %p1413_p5 = scmp.lt.s32.totalorder %s1407_s30, %s1407_s30 }
   0xe   :  { %p1414_p6 = por %p1413_p5, %p1412_p4 }
  0x10   :  { %p1415_p7 = pnand %p1414_p6, %p1408_p3 }
  0x12   :  { %1418 = shalt.err (!%p1415_p7)
}
  0x13   :  { %s1540_s7 = smov 64   ;;  %s1541_s8 = smov 4  }
  0x14   :  { %38 = dma.hbm_to_vmem [thread:$0]  %s1703_s1, 8192, %s33_s22, [#allocation6], %s1540_s7, %s1540_s7, %s1541_s8  }
  0x15   :  { %s1542_s11 = smov [#allocation2]   ;;  %s1543_s13 = smov [#allocation7]  }
  0x16   :  { %s23_s12 = sshll.u32 %s1542_s11, 4  ;;  %s44_s14 = sshll.u32 %s1543_s13, 4  ;;  %s24_s12 = int_to_ptr.vmem [resolvable:$true] %s23_s12  ;;  %s45_s14 = int_to_ptr.vmem [resolvable:$true] %s44_s14 }
  0x17   :  { %s1419_s17 = scalar_lea.hbm %s1702_s0, 1024 }
  0x18   :  { %p1420_p8 = scmp.ne.s32.totalorder %s1702_s0, %s1419_s17  ;;  %p1423_p9 = scmp.lt.u32.totalorder %s1419_s17, %s1702_s0 }
  0x1a   :  { %p1425_p10 = pnand %p1423_p9, %p1420_p8 }
  0x1c   :  { %1428 = shalt.err (!%p1425_p10)
}
  0x1d   :  { %s1429_s1 = scalar_lea.vmem %s24_s12, 1024  ;;  %p1434_p12 = scmp.lt.s32.totalorder %s24_s12, %s24_s12 }
  0x1e   :  { %p1430_p11 = scmp.ne.s32.totalorder %s24_s12, %s1429_s1  ;;  %p1435_p13 = scmp.lt.s32.totalorder %s1429_s1, %s1429_s1 }
  0x20   :  { %p1436_p0 = por %p1435_p13, %p1434_p12 }
  0x22   :  { %p1437_p1 = pnand %p1436_p0, %p1430_p11 }
  0x24   :  { %1440 = shalt.err (!%p1437_p1)
}
  0x25   :  { %26 = dma.hbm_to_vmem [thread:$0]  %s1702_s0, 1024, %s24_s12, [#allocation3]  }
  0x26   :  { %s1441_s26 = scalar_lea.hbm %s1704_s2, 1024 }
  0x27   :  { %p1442_p2 = scmp.ne.s32.totalorder %s1704_s2, %s1441_s26  ;;  %p1445_p3 = scmp.lt.u32.totalorder %s1441_s26, %s1704_s2 }
  0x29   :  { %p1447_p4 = pnand %p1445_p3, %p1442_p2 }
  0x2b   :  { %1450 = shalt.err (!%p1447_p4)
}
  0x2c   :  { %s1451_s9 = scalar_lea.vmem %s45_s14, 1024  ;;  %p1456_p6 = scmp.lt.s32.totalorder %s45_s14, %s45_s14 }
  0x2d   :  { %p1452_p5 = scmp.ne.s32.totalorder %s45_s14, %s1451_s9  ;;  %p1457_p7 = scmp.lt.s32.totalorder %s1451_s9, %s1451_s9 }
  0x2f   :  { %p1458_p8 = por %p1457_p7, %p1456_p6 }
  0x31   :  { %p1459_p9 = pnand %p1458_p8, %p1452_p5 }
  0x33   :  { %1462 = shalt.err (!%p1459_p9)
}
  0x34   :  { %50 = dma.hbm_to_vmem [thread:$0]  %s1704_s2, 1024, %s45_s14, [#allocation6], %s1540_s7, %s1540_s7, %s1541_s8  }
  0x35   :  { %s1544_s11 = smov [#allocation8]   ;;  %s1463_s16 = scalar_lea.hbm %s1705_s3, 1024 }
  0x36   :  { %s56_s12 = sshll.u32 %s1544_s11, 4  ;;  %p1464_p10 = scmp.ne.s32.totalorder %s1705_s3, %s1463_s16  ;;  %s57_s12 = int_to_ptr.vmem [resolvable:$true] %s56_s12 }
  0x37   :  { %p1467_p11 = scmp.lt.u32.totalorder %s1463_s16, %s1705_s3 }
  0x39   :  { %p1469_p12 = pnand %p1467_p11, %p1464_p10 }
  0x3b   :  { %1472 = shalt.err (!%p1469_p12)
}
  0x3c   :  { %s1473_s21 = scalar_lea.vmem %s57_s12, 1024  ;;  %p1478_p0 = scmp.lt.s32.totalorder %s57_s12, %s57_s12 }
  0x3d   :  { %p1474_p13 = scmp.ne.s32.totalorder %s57_s12, %s1473_s21  ;;  %p1479_p1 = scmp.lt.s32.totalorder %s1473_s21, %s1473_s21 }
  0x3f   :  { %p1480_p2 = por %p1479_p1, %p1478_p0 }
  0x41   :  { %p1481_p3 = pnand %p1480_p2, %p1474_p13 }
  0x43   :  { %1484 = shalt.err (!%p1481_p3)
}
  0x44   :  { %62 = dma.hbm_to_vmem [thread:$0]  %s1705_s3, 1024, %s57_s12, [#allocation9], %s1540_s7, %s1540_s7, %s1541_s8  }
  0x45   :  { %1529 = dma.done.wait [#allocation3], 1024  }
  0x46   :  { %1530 = vsyncadd [#allocation3], 4294966272 }
  0x47   :  { %1531 = dma.done.wait [#allocation6], 9216  }
  0x48   :  { %1532 = vsyncadd [#allocation6], 4294958080 }
  0x49   :  { %1533 = dma.done.wait [#allocation9], 1024  }
  0x4a   :  { %1534 = vsyncadd [#allocation9], 4294966272  ;;  %v1315_v0 = vld [vmem:[#allocation5 + $0x40] sm:$0xff]   ;;  %v1319_v4 = vld [vmem:[#allocation5 + $0x48] sm:$0xff]   ;;  %vm1546_vm0 = vmmov 0  }
  0x4b   :  { %v1316_v1 = vld [vmem:[#allocation5 + $0xc0] sm:$0xff]   ;;  %1159 = vmatprep.subr.bf16.mxu0 %v1315_v0  ;;  %v1320_v5 = vld [vmem:[#allocation5 + $0xc8] sm:$0xff]   ;;  %v1323_v8 = vld [vmem:[#allocation5 + $0x50] sm:$0xff]  }
  0x4c   :  { %v1317_v2 = vld [vmem:[#allocation5] sm:$0xff]   ;;  %1181 = vmatprep.subr.bf16.mxu1 %v1316_v1  ;;  %v1321_v6 = vld [vmem:[#allocation5 + $0x8] sm:$0xff]   ;;  %v1324_v9 = vld [vmem:[#allocation5 + $0xd0] sm:$0xff]  }
  0x4d   :  { %v1318_v3 = vld [vmem:[#allocation5 + $0x80] sm:$0xff]   ;;  %1160 = vmatpush3.bf16.msra.mxu0 %v1317_v2  ;;  %v1322_v7 = vld [vmem:[#allocation5 + $0x88] sm:$0xff]   ;;  %v1325_v10 = vld [vmem:[#allocation5 + $0x10] sm:$0xff]  }
  0x4e   :  { %1182 = vmatpush3.bf16.msra.mxu1 %v1318_v3  ;;  %1161 = vmatprep.subr.bf16.mxu0 %v1319_v4  ;;  %v1326_v11 = vld [vmem:[#allocation5 + $0x90] sm:$0xff]   ;;  %v1327_v12 = vld [vmem:[#allocation5 + $0x58] sm:$0xff]   ;;  %v1331_v16 = vld [vmem:[#allocation5 + $0x60] sm:$0xff]  }
  0x4f   :  { %1183 = vmatprep.subr.bf16.mxu1 %v1320_v5  ;;  %v1328_v13 = vld [vmem:[#allocation5 + $0xd8] sm:$0xff]   ;;  %v1332_v17 = vld [vmem:[#allocation5 + $0xe0] sm:$0xff]   ;;  %v1335_v20 = vld [vmem:[#allocation5 + $0x68] sm:$0xff]  }
  0x50   :  { %v1329_v14 = vld [vmem:[#allocation5 + $0x18] sm:$0xff]   ;;  %v1333_v18 = vld [vmem:[#allocation5 + $0x20] sm:$0xff]   ;;  %v1336_v21 = vld [vmem:[#allocation5 + $0xe8] sm:$0xff]  }
  0x51   :  { %1162 = vmatpush3.bf16.msra.mxu0 %v1321_v6  ;;  %v1330_v15 = vld [vmem:[#allocation5 + $0x98] sm:$0xff]   ;;  %v1334_v19 = vld [vmem:[#allocation5 + $0xa0] sm:$0xff]   ;;  %v1337_v22 = vld [vmem:[#allocation5 + $0x28] sm:$0xff]  }
  0x52   :  { %1184 = vmatpush3.bf16.msra.mxu1 %v1322_v7  ;;  %1163 = vmatprep.subr.bf16.mxu0 %v1323_v8  ;;  %v1338_v23 = vld [vmem:[#allocation5 + $0xa8] sm:$0xff]   ;;  %v1339_v24 = vld [vmem:[#allocation5 + $0x70] sm:$0xff]   ;;  %v1343_v28 = vld [vmem:[#allocation5 + $0x78] sm:$0xff]  }
  0x53   :  { %1185 = vmatprep.subr.bf16.mxu1 %v1324_v9  ;;  %v1340_v25 = vld [vmem:[#allocation5 + $0xf0] sm:$0xff]   ;;  %v1344_v29 = vld [vmem:[#allocation5 + $0xf8] sm:$0xff]   ;;  %v85_v32 = vld [vmem:[#allocation2 + $0x8] sm:$0xff] }
  0x54   :  { %v1341_v26 = vld [vmem:[#allocation5 + $0x30] sm:$0xff]   ;;  %v1345_v30 = vld [vmem:[#allocation5 + $0x38] sm:$0xff]   ;;  %v84_v34 = vld [vmem:[#allocation2] sm:$0xff]  ;;  %v93_v35 = vpack.c.bf16 %v85_v32, %v85_v32 }
  0x55   :  { %1164 = vmatpush3.bf16.msra.mxu0 %v1325_v10  ;;  %v1342_v27 = vld [vmem:[#allocation5 + $0xb0] sm:$0xff]   ;;  %v1346_v31 = vld [vmem:[#allocation5 + $0xb8] sm:$0xff]   ;;  %v92_v37 = vpack.c.bf16 %v84_v34, %v84_v34  ;;  %v1347_v40 = vld [vmem:[#allocation5 + $0x140] sm:$0xff]  }
  0x56   :  { %1186 = vmatpush3.bf16.msra.mxu1 %v1326_v11  ;;  %1165 = vmatprep.subr.bf16.mxu0 %v1327_v12  ;;  %v87_v33 = vld [vmem:[#allocation2 + $0x18] sm:$0xff]  ;;  %v86_v38 = vld [vmem:[#allocation2 + $0x10] sm:$0xff]  ;;  %v1348_v41 = vld [vmem:[#allocation5 + $0x1c0] sm:$0xff]  }
  0x57   :  { %1187 = vmatprep.subr.bf16.mxu1 %v1328_v13  ;;  %v95_v36 = vpack.c.bf16 %v87_v33, %v87_v33  ;;  %v94_v39 = vpack.c.bf16 %v86_v38, %v86_v38  ;;  %644 = vmatprep.mubr.bf16.mxu0 %v93_v35  ;;  %v1349_v42 = vld [vmem:[#allocation5 + $0x100] sm:$0xff]   ;;  %v1351_v44 = vld [vmem:[#allocation5 + $0x148] sm:$0xff]   ;;  %v1355_v48 = vld [vmem:[#allocation5 + $0x150] sm:$0xff]  }
  0x58   :  { %v1350_v43 = vld [vmem:[#allocation5 + $0x180] sm:$0xff]   ;;  %v1352_v45 = vld [vmem:[#allocation5 + $0x1c8] sm:$0xff]   ;;  %v1356_v49 = vld [vmem:[#allocation5 + $0x1d0] sm:$0xff]  }
  0x59   :  { %1166 = vmatpush3.bf16.msra.mxu0 %v1329_v14  ;;  %684 = vmatprep.mubr.bf16.mxu1 %v95_v36  ;;  %v1353_v46 = vld [vmem:[#allocation5 + $0x108] sm:$0xff]   ;;  %v1357_v50 = vld [vmem:[#allocation5 + $0x110] sm:$0xff]   ;;  %v1359_v52 = vld [vmem:[#allocation5 + $0x158] sm:$0xff]   ;;  %v779_v36 = vlaneseq }
  0x5a   :  { %1188 = vmatpush3.bf16.msra.mxu1 %v1330_v15  ;;  %1167 = vmatprep.subr.bf16.mxu0 %v1331_v16  ;;  %v1354_v47 = vld [vmem:[#allocation5 + $0x188] sm:$0xff]   ;;  %v1358_v51 = vld [vmem:[#allocation5 + $0x190] sm:$0xff]   ;;  %v1360_v53 = vld [vmem:[#allocation5 + $0x1d8] sm:$0xff]  }
  0x5b   :  { %1189 = vmatprep.subr.bf16.mxu1 %v1332_v17  ;;  %v1361_v54 = vld [vmem:[#allocation5 + $0x118] sm:$0xff]   ;;  %v1363_v56 = vld [vmem:[#allocation5 + $0x160] sm:$0xff]   ;;  %v1367_v60 = vld [vmem:[#allocation5 + $0x168] sm:$0xff]   ;;  %v1545_v17 = vmov 0.0  }
  0x5c   :  { %v1362_v55 = vld [vmem:[#allocation5 + $0x198] sm:$0xff]   ;;  %v1364_v57 = vld [vmem:[#allocation5 + $0x1e0] sm:$0xff]   ;;  %v1368_v61 = vld [vmem:[#allocation5 + $0x1e8] sm:$0xff]  }
  0x5d   :  { %1168 = vmatpush3.bf16.msra.mxu0 %v1333_v18  ;;  %v1365_v58 = vld [vmem:[#allocation5 + $0x120] sm:$0xff]   ;;  %v1369_v62 = vld [vmem:[#allocation5 + $0x128] sm:$0xff]   ;;  %v1371_v0 = vld [vmem:[#allocation5 + $0x170] sm:$0xff]  }
  0x5e   :  { %1190 = vmatpush3.bf16.msra.mxu1 %v1334_v19  ;;  %1169 = vmatprep.subr.bf16.mxu0 %v1335_v20  ;;  %v1366_v59 = vld [vmem:[#allocation5 + $0x1a0] sm:$0xff]   ;;  %v1370_v63 = vld [vmem:[#allocation5 + $0x1a8] sm:$0xff]   ;;  %v1372_v1 = vld [vmem:[#allocation5 + $0x1f0] sm:$0xff]  }
  0x5f   :  { %1191 = vmatprep.subr.bf16.mxu1 %v1336_v21  ;;  %v1373_v2 = vld [vmem:[#allocation5 + $0x130] sm:$0xff]   ;;  %v1375_v4 = vld [vmem:[#allocation5 + $0x178] sm:$0xff]   ;;  %v89_v8 = vld [vmem:[#allocation2 + $0x28] sm:$0xff] }
  0x60   :  { %v1374_v3 = vld [vmem:[#allocation5 + $0x1b0] sm:$0xff]   ;;  %v1376_v5 = vld [vmem:[#allocation5 + $0x1f8] sm:$0xff]   ;;  %v97_v10 = vpack.c.bf16 %v89_v8, %v89_v8  ;;  %v88_v12 = vld [vmem:[#allocation2 + $0x20] sm:$0xff] }
  0x61   :  { %1170 = vmatpush3.bf16.msra.mxu0 %v1337_v22  ;;  %v1377_v6 = vld [vmem:[#allocation5 + $0x138] sm:$0xff]   ;;  %v90_v13 = vld [vmem:[#allocation2 + $0x30] sm:$0xff]  ;;  %v96_v14 = vpack.c.bf16 %v88_v12, %v88_v12  ;;  %v1379_v16 = vld [vmem:[#allocation7] sm:$0xff]  }
  0x62   :  { %1192 = vmatpush3.bf16.msra.mxu1 %v1338_v23  ;;  %1171 = vmatprep.subr.bf16.mxu0 %v1339_v24  ;;  %v1378_v7 = vld [vmem:[#allocation5 + $0x1b8] sm:$0xff]   ;;  %v98_v15 = vpack.c.bf16 %v90_v13, %v90_v13  ;;  %v1380_v18 = vld [vmem:[#allocation7 + $0x8] sm:$0xff]   ;;  %v1381_v19 = vld [vmem:[#allocation7 + $0x10] sm:$0xff]  }
  0x63   :  { %1193 = vmatprep.subr.bf16.mxu1 %v1340_v25  ;;  %v91_v9 = vld [vmem:[#allocation2 + $0x38] sm:$0xff]  ;;  %v1383_v21 = vld [vmem:[#allocation7 + $0x20] sm:$0xff]   ;;  %v1384_v22 = vld [vmem:[#allocation7 + $0x28] sm:$0xff]  }
  0x64   :  { %v99_v11 = vpack.c.bf16 %v91_v9, %v91_v9  ;;  %v1382_v20 = vld [vmem:[#allocation7 + $0x18] sm:$0xff]   ;;  %v1385_v23 = vld [vmem:[#allocation7 + $0x30] sm:$0xff]  }
  0x65   :  { %1172 = vmatpush3.bf16.msra.mxu0 %v1341_v26  ;;  %v1386_v24 = vld [vmem:[#allocation7 + $0x38] sm:$0xff]  }
  0x66   :  { %1194 = vmatpush3.bf16.msra.mxu1 %v1342_v27  ;;  %1173 = vmatprep.subr.bf16.mxu0 %v1343_v28 }
  0x67   :  { %1195 = vmatprep.subr.bf16.mxu1 %v1344_v29 }
  0x69   :  { %1174 = vmatpush3.bf16.msra.mxu0 %v1345_v30 }
  0x6a   :  { %1196 = vmatpush3.bf16.msra.mxu1 %v1346_v31  ;;  %1203 = vmatprep.subr.bf16.mxu0 %v1347_v40 }
  0x6b   :  { %1225 = vmatprep.subr.bf16.mxu1 %v1348_v41 }
  0x6c   :  { %645 = vmatmul.mubr.bf16.vlgmr.msra.gmra.mrb[0].mxu0 %v92_v37  ;;  %v1652_v37 = vshrl.u32 %v779_v36, 7 }
  0x6d   :  { %685 = vmatmul.mubr.bf16.vlgmr.msra.gmra.mrb[0].mxu1 %v94_v39  ;;  %1204 = vmatpush3.bf16.msra.mxu0 %v1349_v42 }
  0x6e   :  { %1226 = vmatpush3.bf16.msra.mxu1 %v1350_v43  ;;  %1205 = vmatprep.subr.bf16.mxu0 %v1351_v44  ;;  %v781_v44 = vsub.s32 0, %v1652_v37  ;;  %vm897_vm1 = vcmp.lt.s32.totalorder %v1652_v37, 2 }
  0x6f   :  { %1227 = vmatprep.subr.bf16.mxu1 %v1352_v45  ;;  %724 = vmatprep.mubr.bf16.mxu0 %v97_v10 }
  0x70   :  { %764 = vmatprep.mubr.bf16.mxu1 %v99_v11 }
  0x71   :  { %1206 = vmatpush3.bf16.msra.mxu0 %v1353_v46 }
  0x72   :  { %1228 = vmatpush3.bf16.msra.mxu1 %v1354_v47  ;;  %1207 = vmatprep.subr.bf16.mxu0 %v1355_v48  ;;  %v1658_v48 = vld [vmem:[%s1706_s4] sm:$0xff]  ;;  %s1547_s4 = smov [#allocation11]  }
  0x73   :  { %1229 = vmatprep.subr.bf16.mxu1 %v1356_v49  ;;  %s1063_s8 = sshll.u32 %s1547_s4, 4  ;;  %s1064_s8 = int_to_ptr.vmem [resolvable:$true] %s1063_s8 }
  0x74   :  { %s1485_s1 = scalar_lea.vmem %s1064_s8, 128  ;;  %p1490_p5 = scmp.lt.s32.totalorder %s1064_s8, %s1064_s8 }
  0x75   :  { %1208 = vmatpush3.bf16.msra.mxu0 %v1357_v50  ;;  %p1486_p4 = scmp.ne.s32.totalorder %s1064_s8, %s1485_s1  ;;  %p1491_p6 = scmp.lt.s32.totalorder %s1485_s1, %s1485_s1 }
  0x76   :  { %1230 = vmatpush3.bf16.msra.mxu1 %v1358_v51  ;;  %1209 = vmatprep.subr.bf16.mxu0 %v1359_v52  ;;  %v782_v52 = vrot.slane %v1658_v48, %v781_v44 }
  0x77   :  { %1231 = vmatprep.subr.bf16.mxu1 %v1360_v53  ;;  %p1492_p7 = por %p1491_p6, %p1490_p5 }
  0x79   :  { %1210 = vmatpush3.bf16.msra.mxu0 %v1361_v54  ;;  %p1493_p8 = pnand %p1492_p7, %p1486_p4 }
  0x7a   :  { %1232 = vmatpush3.bf16.msra.mxu1 %v1362_v55  ;;  %1211 = vmatprep.subr.bf16.mxu0 %v1363_v56  ;;  %v1387_v56 = vld [vmem:[#allocation8] sm:$0xff]  }
  0x7b   :  { %1233 = vmatprep.subr.bf16.mxu1 %v1364_v57  ;;  %v1388_v57 = vld [vmem:[#allocation8 + $0x8] sm:$0xff]  }
  0x7d   :  { %1212 = vmatpush3.bf16.msra.mxu0 %v1365_v58  ;;  %v1389_v58 = vld [vmem:[#allocation8 + $0x10] sm:$0xff]  }
  0x7e   :  { %1234 = vmatpush3.bf16.msra.mxu1 %v1366_v59  ;;  %1213 = vmatprep.subr.bf16.mxu0 %v1367_v60  ;;  %v1390_v59 = vld [vmem:[#allocation8 + $0x18] sm:$0xff]   ;;  %v1391_v60 = vld [vmem:[#allocation8 + $0x20] sm:$0xff]  }
  0x7f   :  { %1235 = vmatprep.subr.bf16.mxu1 %v1368_v61  ;;  %v1392_v61 = vld [vmem:[#allocation8 + $0x28] sm:$0xff]  }
  0x81   :  { %1214 = vmatpush3.bf16.msra.mxu0 %v1369_v62  ;;  %v1393_v62 = vld [vmem:[#allocation8 + $0x30] sm:$0xff]  }
  0x82   :  { %1236 = vmatpush3.bf16.msra.mxu1 %v1370_v63  ;;  %1215 = vmatprep.subr.bf16.mxu0 %v1371_v0  ;;  %v1394_v63 = vld [vmem:[#allocation8 + $0x38] sm:$0xff]   ;;  %v805_v0 = vsub.s32 1, %v1652_v37 }
  0x83   :  { %1237 = vmatprep.subr.bf16.mxu1 %v1372_v1 }
  0x84   :  { %v806_v1 = vrot.slane %v1658_v48, %v805_v0 }
  0x85   :  { %1216 = vmatpush3.bf16.msra.mxu0 %v1373_v2 }
  0x86   :  { %1238 = vmatpush3.bf16.msra.mxu1 %v1374_v3  ;;  %1217 = vmatprep.subr.bf16.mxu0 %v1375_v4  ;;  %v1150_v3 = vsel %vm897_vm1, 1.0, %v1545_v17 }
  0x87   :  { %1239 = vmatprep.subr.bf16.mxu1 %v1376_v5 }
  0x89   :  { %1218 = vmatpush3.bf16.msra.mxu0 %v1377_v6 }
  0x8a   :  { %1240 = vmatpush3.bf16.msra.mxu1 %v1378_v7  ;;  %1265 = vmatprep.subr.bf16.mxu0 %v1545_v17 }
  0x8b   :  { %1285 = vmatprep.subr.bf16.mxu1 %v1545_v17 }
  0x8c   :  { %725 = vmatmul.mubr.bf16.vlgmr.msra.gmra.mrb[4].mxu0 %v96_v14 }
  0x8d   :  { %765 = vmatmul.mubr.bf16.vlgmr.msra.gmra.mrb[4].mxu1 %v98_v15  ;;  %1266 = vmatpush3.bf16.msra.mxu0 %v1379_v16 }
  0x8e   :  { %1267 = vmatprep.subr.bf16.mxu0 %v1545_v17  ;;  %1281 = vmatprep.mubr.msk.bf16.mxu0 %vm1546_vm0, %v1545_v17 }
  0x8f   :  { %1301 = vmatprep.mubr.msk.bf16.mxu1 %vm1546_vm0, %v1545_v17  ;;  %1286 = vmatpush3.bf16.msra.mxu1 %v1387_v56 }
  0x90   :  { %1287 = vmatprep.subr.bf16.mxu1 %v1545_v17 }
  0x91   :  { %1268 = vmatpush3.bf16.msra.mxu0 %v1380_v18 }
  0x92   :  { %1269 = vmatprep.subr.bf16.mxu0 %v1545_v17 }
  0x93   :  { %1288 = vmatpush3.bf16.msra.mxu1 %v1388_v57 }
  0x94   :  { %1289 = vmatprep.subr.bf16.mxu1 %v1545_v17 }
  0x95   :  { %1270 = vmatpush3.bf16.msra.mxu0 %v1381_v19 }
  0x96   :  { %1271 = vmatprep.subr.bf16.mxu0 %v1545_v17 }
  0x97   :  { %1290 = vmatpush3.bf16.msra.mxu1 %v1389_v58 }
  0x98   :  { %1291 = vmatprep.subr.bf16.mxu1 %v1545_v17 }
  0x99   :  { %1272 = vmatpush3.bf16.msra.mxu0 %v1382_v20 }
  0x9a   :  { %1273 = vmatprep.subr.bf16.mxu0 %v1545_v17 }
  0x9b   :  { %1292 = vmatpush3.bf16.msra.mxu1 %v1390_v59 }
  0x9c   :  { %1293 = vmatprep.subr.bf16.mxu1 %v1545_v17 }
  0x9d   :  { %1274 = vmatpush3.bf16.msra.mxu0 %v1383_v21 }
  0x9e   :  { %1275 = vmatprep.subr.bf16.mxu0 %v1545_v17 }
  0x9f   :  { %1294 = vmatpush3.bf16.msra.mxu1 %v1391_v60 }
  0xa0   :  { %1295 = vmatprep.subr.bf16.mxu1 %v1545_v17 }
  0xa1   :  { %1276 = vmatpush3.bf16.msra.mxu0 %v1384_v22 }
  0xa2   :  { %1277 = vmatprep.subr.bf16.mxu0 %v1545_v17 }
  0xa3   :  { %1296 = vmatpush3.bf16.msra.mxu1 %v1392_v61 }
  0xa4   :  { %1297 = vmatprep.subr.bf16.mxu1 %v1545_v17 }
  0xa5   :  { %1278 = vmatpush3.bf16.msra.mxu0 %v1385_v23 }
  0xa6   :  { %1279 = vmatprep.subr.bf16.mxu0 %v1545_v17 }
  0xa7   :  { %1298 = vmatpush3.bf16.msra.mxu1 %v1393_v62 }
  0xa8   :  { %1299 = vmatprep.subr.bf16.mxu1 %v1545_v17 }
  0xa9   :  { %1280 = vmatpush3.bf16.msra.mxu0 %v1386_v24 }
  0xab   :  { %1300 = vmatpush3.bf16.msra.mxu1 %v1394_v63 }
 0x13f   :  { %v1175_v25 = vpop.f32.mrb[0].mxu0 }
 0x140   :  { %v1197_v26 = vpop.f32.mrb[0].mxu1  ;;  %v1176_v27 = vpop.f32.mrb[1].mxu0 }
 0x141   :  { %v1198_v28 = vpop.f32.mrb[1].mxu1  ;;  %v1177_v29 = vadd.f32 %v1176_v27, %v1175_v25  ;;  %v1178_v31 = vpop.f32.mrb[2].mxu0 }
 0x142   :  { %v1199_v30 = vadd.f32 %v1198_v28, %v1197_v26  ;;  %v1200_v32 = vpop.f32.mrb[2].mxu1  ;;  %v1179_v33 = vpop.f32.mrb[3].mxu0 }
 0x143   :  { %v1201_v34 = vpop.f32.mrb[3].mxu1  ;;  %v933_v33 = vsub.s32 3, %v1652_v37 }
 0x144   :  { %v687_v35 = vadd.f32 %v1199_v30, %v1177_v29  ;;  %v928_v29 = vsub.s32 2, %v1652_v37 }
 0x15f   :  { %v1219_v38 = vpop.f32.mrb[4].mxu0 }
 0x160   :  { %v1241_v39 = vpop.f32.mrb[4].mxu1  ;;  %v1220_v40 = vpop.f32.mrb[5].mxu0 }
 0x161   :  { %v1221_v41 = vadd.f32 %v1220_v40, %v1219_v38  ;;  %v1242_v42 = vpop.f32.mrb[5].mxu1  ;;  %v1222_v43 = vpop.f32.mrb[6].mxu0 }
 0x162   :  { %v1243_v45 = vadd.f32 %v1242_v42, %v1241_v39  ;;  %v1244_v46 = vpop.f32.mrb[6].mxu1  ;;  %v1223_v47 = vpop.f32.mrb[7].mxu0 }
 0x163   :  { %v727_v49 = vadd.f32 %v1221_v41, %v687_v35  ;;  %v1245_v50 = vpop.f32.mrb[7].mxu1 }
 0x165   :  { %v767_v51 = vadd.f32 %v1243_v45, %v727_v49 }
 0x167   :  { %v783_v53 = vadd.f32 %v782_v52, %v767_v51 }
 0x169   :  { %v784_v54 = vmax.f32 %v783_v53, 0.0 }
 0x16b   :  { %v786_v55 = vpack.c.bf16 %v784_v54, %v784_v54  ;;  %785 = vst [vmem:[#allocation11] sm:$0xff] %v784_v54 }
 0x16d   :  { %1282 = vmatmul.mubr.bf16.vlgmr.msra.gmra.mrb[8].mxu0 %v786_v55 }
 0x240   :  { %v889_v2 = vpop.f32.mrb[8].mxu0 }
 0x241   :  { %v890_v4 = vadd.f32 %v889_v2, %v806_v1  ;;  %v1283_v5 = vpop.f32.mrb[9].mxu0 }
 0x242   :  { %v892_v6 = vpop.f32.mrb[10].mxu0 }
 0x243   :  { %v900_v7 = vmul.f32 %v1150_v3, %v890_v4  ;;  %v1284_v8 = vpop.f32.mrb[11].mxu0 }
 0x245   :  { %v901_v9 = vrot.slane %v900_v7, 4 }
 0x247   :  { %v902_v10 = vadd.f32 %v901_v9, %v900_v7 }
 0x249   :  { %v903_v11 = vrot.slane %v902_v10, 2 }
 0x24b   :  { %v904_v12 = vadd.f32 %v903_v11, %v902_v10 }
 0x24d   :  { %v905_v13 = vrot.slane %v904_v12, 1 }
 0x24f   :  { %v906_v14 = vadd.f32 %v905_v13, %v904_v12 }
 0x251   :  { %v907_v15 = vmul.f32 0.5, %v906_v14 }
 0x253   :  { %v908_v16 = vsub.f32 %v890_v4, %v907_v15 }
 0x255   :  { %v909_v18 = vmul.f32 %v1150_v3, %v908_v16 }
 0x257   :  { %v910_v19 = vmul.f32 %v909_v18, %v909_v18 }
 0x259   :  { %v911_v20 = vrot.slane %v910_v19, 4 }
 0x25b   :  { %v912_v21 = vadd.f32 %v911_v20, %v910_v19 }
 0x25d   :  { %v913_v22 = vrot.slane %v912_v21, 2 }
 0x25f   :  { %v914_v23 = vadd.f32 %v913_v22, %v912_v21 }
 0x261   :  { %v915_v17 = vrot.slane %v914_v23, 1 }
 0x263   :  { %v916_v24 = vadd.f32 %v915_v17, %v914_v23 }
 0x265   :  { %v917_v25 = vmul.f32 0.5, %v916_v24 }
 0x267   :  { %v918_v26 = vadd.f32 1e-05, %v917_v25 }
 0x269   :  { %1395 = vrsqrt.f32 %v918_v26 }
 0x273   :  { %v1396_v27 = vpop.eup %1395 }
 0x274   :  { %v920_v28 = vmul.f32 %v1396_v27, %v1658_v48 }
 0x276   :  { %v921_v30 = vmul.f32 %v920_v28, %v907_v15  ;;  %v929_v32 = vrot.slane %v920_v28, %v928_v29 }
 0x278   :  { %v923_v31 = vrot.slane %v921_v30, 7  ;;  %v930_v35 = vmul.f32 %v929_v32, %v890_v4 }
 0x27a   :  { %v925_v34 = vsub.f32 %v1658_v48, %v923_v31 }
 0x27c   :  { %v934_v36 = vrot.slane %v925_v34, %v933_v33 }
 0x27e   :  { %v935_v38 = vadd.f32 %v934_v36, %v930_v35 }
 0x280   :  { %v936_v39 = vmax.f32 %v935_v38, 0.0 }
 0x282   :  { %v937_v40 = vpack.c.bf16 %v936_v39, %v936_v39 }
 0x284   :  { %1302 = vmatmul.mubr.bf16.vlgmr.msra.gmra.mrb[8].mxu1 %v937_v40 }
 0x285   :  { %1496 = shalt.err (!%p1493_p8)
}
 0x286   :  { %s1497_s24 = scalar_lea.hbm %s1708_s6, 128 }
 0x287   :  { %p1498_p9 = scmp.ne.s32.totalorder %s1708_s6, %s1497_s24  ;;  %p1501_p10 = scmp.lt.u32.totalorder %s1497_s24, %s1708_s6 }
 0x289   :  { %p1503_p11 = pnand %p1501_p10, %p1498_p9 }
 0x28b   :  { %1506 = shalt.err (!%p1503_p11)
}
 0x28c   :  { %1066 = dma.vmem_to_hbm [thread:$0]  %s1064_s8, 128, %s1708_s6, [#allocation12]   ;;  %v956_v41 = vsub.s32 4, %v1652_v37 }
 0x28d   :  { %s1548_s9 = smov [#allocation10]  }
 0x28e   :  { %v957_v42 = vrot.slane %v1658_v48, %v956_v41  ;;  %s1053_s0 = sshll.u32 %s1548_s9, 4  ;;  %s1054_s0 = int_to_ptr.vmem [resolvable:$true] %s1053_s0 }
 0x28f   :  { %s1507_s10 = scalar_lea.vmem %s1054_s0, 128  ;;  %p1512_p13 = scmp.lt.s32.totalorder %s1054_s0, %s1054_s0 }
 0x290   :  { %p1508_p12 = scmp.ne.s32.totalorder %s1054_s0, %s1507_s10  ;;  %p1513_p0 = scmp.lt.s32.totalorder %s1507_s10, %s1507_s10 }
 0x292   :  { %p1514_p1 = por %p1513_p0, %p1512_p13 }
 0x294   :  { %p1515_p2 = pnand %p1514_p1, %p1508_p12 }
 0x357   :  { %v1040_v43 = vpop.f32.mrb[8].mxu1 }
 0x358   :  { %v1041_v44 = vadd.f32 %v1040_v43, %v957_v42  ;;  %v1303_v45 = vpop.f32.mrb[9].mxu1 }
 0x359   :  { %v1043_v46 = vpop.f32.mrb[10].mxu1 }
 0x35a   :  { %1046 = vst [vmem:[#allocation10] sm:$0xff] %v1041_v44  ;;  %v1304_v47 = vpop.f32.mrb[11].mxu1 }
 0x35b   :  { %1518 = shalt.err (!%p1515_p2)
}
 0x35c   :  { %s1519_s12 = scalar_lea.hbm %s1707_s5, 128 }
 0x35d   :  { %p1520_p3 = scmp.ne.s32.totalorder %s1707_s5, %s1519_s12  ;;  %p1523_p4 = scmp.lt.u32.totalorder %s1519_s12, %s1707_s5 }
 0x35f   :  { %p1525_p5 = pnand %p1523_p4, %p1520_p3 }
 0x361   :  { %1528 = shalt.err (!%p1525_p5)
}
 0x362   :  { %1056 = dma.vmem_to_hbm [thread:$0]  %s1054_s0, 128, %s1707_s5, [#allocation4]  }
 0x363   :  { %1535 = dma.done.wait [#allocation4], 128  }
 0x364   :  { %1536 = vsyncadd [#allocation4], 4294967168 }
 0x365   :  { %1537 = dma.done.wait [#allocation12], 128  }
 0x366   :  { %1538 = vsyncadd [#allocation12], 4294967168 }
 0x367   :  { %1073 = vsyncpa [#allocation3], 1 }
 0x368   :  { %1074 = vsyncpa [#allocation6], 1 }
 0x369   :  { %1075 = vsyncpa [#allocation9], 1 }
 0x36a   :  { %1076 = vsyncpa [#allocation4], 1 }
 0x36b   :  { %1077 = vsyncpa [#allocation12], 1 }

</bundles_post_ra>
